<compile_context>
chip_gen: v7x
topology: tpu7x:2x2x1
jax: 0.10.0
libtpu: 0.0.40
codegen_flags: <defaults>
</compile_context>

<pallas_src>
import functools

import jax
import jax.numpy as jnp
from jax.experimental import pallas as pl
from jax.experimental.pallas import tpu as pltpu


def _round_up(a, b):
    return (a + b - 1) // b * b


def _choose_tile_n(n, c, itemsize):
    # Target ~8 MiB per x input buffer (=> 16 MiB double-buffered), which fits
    # comfortably under the 32 MiB scoped-VMEM limit we request below on all
    # of v5e / v6e / v7x.
    budget = 8 * 1024 * 1024
    t = budget // max(1, c * itemsize)
    t = max(8, min(1024, (t // 8) * 8))
    return min(t, _round_up(n, 8))


def _balanced_softmax_kernel(x_ref, y_ref, loghist_ref, out_ref, *, n_valid, tile_n):
    # x_ref:       (TILE_N, C)   logits tile (any float dtype; cast in-register)
    # y_ref:       (TILE_N, 1)   int32 labels
    # loghist_ref: (1, C)        f32 log(histogram + 1), resident across tiles
    # out_ref:     (1, 8, 128)   f32 per-tile partial loss sum (replicated)
    i = pl.program_id(0)

    x = x_ref[...].astype(jnp.float32) + loghist_ref[...]            # (TILE_N, C)

    # Numerically stable log-sum-exp over classes.
    m = jnp.max(x, axis=-1, keepdims=True)                           # (TILE_N, 1)
    lse = m + jnp.log(jnp.sum(jnp.exp(x - m), axis=-1, keepdims=True))

    # Gather x[n, y[n]] via compare+select (no dynamic per-lane gather on TPU).
    # Precondition: 0 <= y < C (out-of-range labels silently yield picked = 0).
    col = jax.lax.broadcasted_iota(jnp.int32, x.shape, 1)            # (TILE_N, C)
    picked = jnp.sum(jnp.where(col == y_ref[...], x, 0.0),
                     axis=-1, keepdims=True)                         # (TILE_N, 1)

    per_sample = lse - picked                                        # (TILE_N, 1)

    # Mask out batch-padding rows (ragged last tile => undefined boundary
    # reads; the mask makes them contribute exactly 0 to the partial sum).
    row = jax.lax.broadcasted_iota(jnp.int32, per_sample.shape, 0) + i * tile_n
    per_sample = jnp.where(row < n_valid, per_sample, 0.0)

    partial = jnp.sum(per_sample)
    # Lane-dense (8, 128) block => unmasked full-width store; keeps the batch
    # grid axis fully "parallel" (no cross-step accumulator).
    out_ref[...] = jnp.full(out_ref.shape, partial, dtype=jnp.float32)


def balanced_softmax_loss(x, y, histogram, reduction="mean", tile_n=None):
    """Matches BalancedSoftmaxLoss.forward (reduction in {'mean', 'sum'}).

    x: (N, C) float (f32 or bf16) logits
    y: (N,)   int labels in [0, C)
    histogram: (C,) float class counts (module adds +1 internally)
    """
    n, c = x.shape
    loghist = jnp.log(histogram.astype(jnp.float32) + 1.0).reshape(1, c)

    if tile_n is None:
        tile_n = _choose_tile_n(n, c, x.dtype.itemsize)
    num_tiles = (n + tile_n - 1) // tile_n

    y2 = y.reshape(n, 1).astype(jnp.int32)

    kernel = functools.partial(_balanced_softmax_kernel, n_valid=n, tile_n=tile_n)

    # Advisory cost hint so XLA schedules neighbours around this HBM-bound call.
    bytes_accessed = (n * c * x.dtype.itemsize        # logits
                      + n * 4 + c * 4                 # labels + log-hist
                      + num_tiles * 8 * 128 * 4)      # partial-sum blocks
    cost = pl.CostEstimate(flops=5 * n * c,
                           transcendentals=n * c + n,
                           bytes_accessed=bytes_accessed)

    partials = pl.pallas_call(
        kernel,
        out_shape=jax.ShapeDtypeStruct((num_tiles, 8, 128), jnp.float32),
        grid=(num_tiles,),
        in_specs=[
            pl.BlockSpec((tile_n, c), lambda i: (i, 0)),   # streamed logits tiles
            pl.BlockSpec((tile_n, 1), lambda i: (i, 0)),   # labels
            pl.BlockSpec((1, c), lambda i: (0, 0)),        # resident log-hist
        ],
        out_specs=pl.BlockSpec((1, 8, 128), lambda i: (i, 0, 0)),
        compiler_params=pltpu.CompilerParams(
            dimension_semantics=("parallel",),             # shard tiles across TCs
            vmem_limit_bytes=32 * 1024 * 1024,
        ),
        cost_estimate=cost,
    )(x, y2, loghist)

    total = jnp.sum(partials[:, 0, 0])
    if reduction == "sum":
        return total
    if reduction == "mean":
        return total / n
    # TODO(synk): reduction='none' needs a per-sample (N,)-shaped output path.
    raise NotImplementedError(f"reduction={reduction!r} not implemented")


def _reference(x, y, histogram):
    # pure-JAX reference of the PyTorch forward
    xb = x + jnp.log(histogram + 1.0)[None, :]
    lse = jax.nn.logsumexp(xb, axis=-1)
    picked = jnp.take_along_axis(xb, y[:, None], axis=-1)[:, 0]
    return jnp.mean(lse - picked)


if __name__ == "__main__":
    key = jax.random.PRNGKey(0)

    cases = [
        # (N, C, dtype, tile_n override)
        (12, 32, jnp.float32, None),   # N < tile and not a multiple of 8
        (48, 128, jnp.float32, 16),    # multiple grid tiles (3 batch tiles)
        (40, 128, jnp.float32, 16),    # ragged last tile (3 tiles, 8 valid rows)
        (32, 64, jnp.bfloat16, None),  # bf16 on the wire, f32 math in-kernel
    ]

    for idx, (n, c, dtype, tn) in enumerate(cases):
        k1, k2, k3 = jax.random.split(jax.random.fold_in(key, idx), 3)
        x = jax.random.normal(k1, (n, c), dtype=jnp.float32).astype(dtype)
        y = jax.random.randint(k2, (n,), 0, c, dtype=jnp.int32)
        histogram = jax.random.randint(k3, (c,), 0, 100, dtype=jnp.int32).astype(
            jnp.float32
        )

        loss = jax.block_until_ready(
            balanced_softmax_loss(x, y, histogram, reduction="mean", tile_n=tn)
        )
        ref = _reference(x.astype(jnp.float32), y, histogram)
        assert jnp.allclose(loss, ref, atol=1e-5, rtol=1e-5), (idx, loss, ref)

        loss_sum = jax.block_until_ready(
            balanced_softmax_loss(x, y, histogram, reduction="sum", tile_n=tn)
        )
        ref_sum = ref * n
        assert jnp.allclose(loss_sum, ref_sum, atol=1e-4, rtol=1e-5), (
            idx,
            loss_sum,
            ref_sum,
        )

    print("KERNEL_OK")
</pallas_src>

<mosaic_0001>
module attributes {stable_mosaic.version = 11 : i64} {
  func.func @_balanced_softmax_kernel(%arg0: i32, %arg1: memref<16x32xf32, #tpu.memory_space<vmem>>, %arg2: memref<16x1xi32, #tpu.memory_space<vmem>>, %arg3: memref<1x32xf32, #tpu.memory_space<vmem>>, %arg4: memref<1x8x128xf32, #tpu.memory_space<vmem>>) attributes {dimension_semantics = [#tpu.dimension_semantics<parallel>], iteration_bounds = array<i64: 1>, scalar_prefetch = 0 : i64, scratch_operands = 0 : i64, tpu.core_type = #tpu.core_type<tc>, window_params = [{transform_indices = @transform_0, window_bounds = array<i64: 16, 32>}, {transform_indices = @transform_1, window_bounds = array<i64: 16, 1>}, {pipeline_mode = #tpu.pipeline_mode<synchronous>, transform_indices = @transform_2, window_bounds = array<i64: 1, 32>}, {transform_indices = @transform_3, window_bounds = array<i64: 1, 8, 128>}]} {
    %c0 = arith.constant 0 : index
    %c0_0 = arith.constant 0 : index
    %0 = vector.load %arg1[%c0, %c0_0] : memref<16x32xf32, #tpu.memory_space<vmem>>, vector<16x32xf32>
    %c0_1 = arith.constant 0 : index
    %c0_2 = arith.constant 0 : index
    %1 = vector.load %arg3[%c0_1, %c0_2] : memref<1x32xf32, #tpu.memory_space<vmem>>, vector<1x32xf32>
    %2 = vector.broadcast %1 : vector<1x32xf32> to vector<16x32xf32>
    %3 = arith.addf %0, %2 : vector<16x32xf32>
    %cst = arith.constant dense<0xFF800000> : vector<16xf32>
    %4 = vector.multi_reduction <maximumf>, %3, %cst [1] : vector<16x32xf32> to vector<16xf32>
    %5 = vector.shape_cast %4 : vector<16xf32> to vector<16x1xf32>
    %6 = vector.broadcast %5 : vector<16x1xf32> to vector<16x32xf32>
    %7 = arith.subf %3, %6 : vector<16x32xf32>
    %8 = math.exp %7 : vector<16x32xf32>
    %cst_3 = arith.constant dense<0.000000e+00> : vector<16xf32>
    %9 = vector.multi_reduction <add>, %8, %cst_3 [1] : vector<16x32xf32> to vector<16xf32>
    %10 = vector.shape_cast %9 : vector<16xf32> to vector<16x1xf32>
    %11 = math.log %10 : vector<16x1xf32>
    %12 = arith.addf %5, %11 : vector<16x1xf32>
    %13 = tpu.iota {dimensions = array<i32: 1>} : vector<16x32xi32>
    %c0_4 = arith.constant 0 : index
    %c0_5 = arith.constant 0 : index
    %14 = vector.load %arg2[%c0_4, %c0_5] : memref<16x1xi32, #tpu.memory_space<vmem>>, vector<16x1xi32>
    %15 = vector.broadcast %14 : vector<16x1xi32> to vector<16x32xi32>
    %16 = arith.cmpi eq, %13, %15 : vector<16x32xi32>
    %cst_6 = arith.constant 0.000000e+00 : f32
    %17 = vector.broadcast %cst_6 : f32 to vector<16x32xf32>
    %18 = arith.select %16, %3, %17 : vector<16x32xi1>, vector<16x32xf32>
    %cst_7 = arith.constant dense<0.000000e+00> : vector<16xf32>
    %19 = vector.multi_reduction <add>, %18, %cst_7 [1] : vector<16x32xf32> to vector<16xf32>
    %20 = vector.shape_cast %19 : vector<16xf32> to vector<16x1xf32>
    %21 = arith.subf %12, %20 : vector<16x1xf32>
    %22 = tpu.iota {dimensions = array<i32: 0>} : vector<16x1xi32>
    %c16_i32 = arith.constant 16 : i32
    %23 = arith.muli %arg0, %c16_i32 : i32
    %24 = vector.broadcast %23 : i32 to vector<16x1xi32>
    %25 = arith.addi %22, %24 : vector<16x1xi32>
    %c12_i32 = arith.constant 12 : i32
    %26 = vector.broadcast %c12_i32 : i32 to vector<16x1xi32>
    %27 = arith.cmpi slt, %25, %26 : vector<16x1xi32>
    %cst_8 = arith.constant 0.000000e+00 : f32
    %28 = vector.broadcast %cst_8 : f32 to vector<16x1xf32>
    %29 = arith.select %27, %21, %28 : vector<16x1xi1>, vector<16x1xf32>
    %30 = vector.shape_cast %29 : vector<16x1xf32> to vector<1x16x1xf32>
    %cst_9 = arith.constant dense<0.000000e+00> : vector<1xf32>
    %31 = vector.multi_reduction <add>, %30, %cst_9 [1, 2] : vector<1x16x1xf32> to vector<1xf32>
    %32 = vector.shape_cast %31 : vector<1xf32> to vector<1x1x1xf32>
    %33 = vector.extract %32[0, 0, 0] : f32 from vector<1x1x1xf32>
    %34 = vector.broadcast %33 : f32 to vector<1x8x128xf32>
    %c0_10 = arith.constant 0 : index
    %c0_11 = arith.constant 0 : index
    %c0_12 = arith.constant 0 : index
    %35 = vector.load %arg4[%c0_10, %c0_11, %c0_12] : memref<1x8x128xf32, #tpu.memory_space<vmem>>, vector<1x8x128xf32>
    tpu.vector_store %arg4[%c0_10, %c0_11, %c0_12], %34 {strides = array<i32>} : memref<1x8x128xf32, #tpu.memory_space<vmem>>, vector<1x8x128xf32>,
    return
  }
  func.func @transform_0(%arg0: i32) -> (i32, i32) {
    %c0_i32 = arith.constant 0 : i32
    %c0_i32_0 = arith.constant 0 : i32
    return %arg0, %c0_i32 : i32, i32
  }
  func.func @transform_1(%arg0: i32) -> (i32, i32) {
    %c0_i32 = arith.constant 0 : i32
    %c0_i32_0 = arith.constant 0 : i32
    return %arg0, %c0_i32 : i32, i32
  }
  func.func @transform_2(%arg0: i32) -> (i32, i32) {
    %c0_i32 = arith.constant 0 : i32
    %c0_i32_0 = arith.constant 0 : i32
    %c0_i32_1 = arith.constant 0 : i32
    return %c0_i32, %c0_i32_0 : i32, i32
  }
  func.func @transform_3(%arg0: i32) -> (i32, i32, i32) {
    %c0_i32 = arith.constant 0 : i32
    %c0_i32_0 = arith.constant 0 : i32
    %c0_i32_1 = arith.constant 0 : i32
    return %arg0, %c0_i32, %c0_i32_0 : i32, i32, i32
  }
}

</mosaic_0001>

<bundles_post_ra>
// kernel: tpu_custom_call.1
= control target key start
LH: loop header
LB: loop body
LE: loop exit
PB: predicated region body
PF: predicated region fallthrough
CT: control target
= control target key end

     0   :  { %vm26_vm0 = vcmask 261120   ;;  %v152_v5 = vmov 0   ;;  %s207_s0 = inlined_call_operand.vmem [shape: f32[12,32], index: 0, kind: input, shape index: {}]   ;;  %s208_s1 = inlined_call_operand.vmem [shape: s32[12,1], index: 1, kind: input, shape index: {}]   ;;  %s209_s2 = inlined_call_operand.vmem [shape: f32[1,32], index: 2, kind: input, shape index: {}]   ;;  %s210_s3 = inlined_call_operand.hbm [shape: f32[1,8,128], index: 3, kind: output, shape index: {}]  }
   0x1   :  { %v16_v0 = vld [vmem:[%s207_s0 + $0x8] sm:$0xff]  ;;  %v113_v1 = vld [vmem:[%s209_s2] ss:$0 sm:$0xff]  ;;  %118 = vset.pattern.permute.xlu1 %v152_v5  ;;  %119 = vset.pattern.permute.xlu0 %v152_v5 }
   0x2   :  { %v15_v2 = vld [vmem:[%s207_s0] sm:$0xff]  ;;  %v25_v3 = vadd.f32 %v113_v1, %v16_v0  ;;  %v54_v6 = vld [vmem:[%s208_s1 + $0x8] sm:$0xff] }
   0x3   :  { %v24_v4 = vadd.f32 %v113_v1, %v15_v2 }
   0x4   :  { %8 = vsyncpa [#allocation3], 0  ;;  %59 = vperm.xlu1 %118, %v54_v6   ;;  %v30_v7 = vsel %vm26_vm0, %v25_v3, -inf  ;;  %v53_v8 = vld [vmem:[%s208_s1] sm:$0xff]  ;;  %v51_v14 = vlaneseq  ;;  %vm84_vm4 = vcmask 7168   ;;  %s153_s0 = smov [#allocation2]  }
   0x5   :  { %31 = vmax.xlane.f32.xlu0 %v30_v7  ;;  %v27_v9 = vsel %vm26_vm0, %v24_v4, -inf  ;;  %s105_s1 = sshll.u32 %s153_s0, 4  ;;  %s106_s1 = int_to_ptr.vmem [resolvable:$true] %s105_s1 }
   0x6   :  { %v52_v18 = vand.u32 127, %v51_v14  ;;  %v74_v30 = vshrl.u32 %v51_v14, 7  ;;  %s128_s22 = scalar_lea.vmem %s106_s1, 128  ;;  %p133_p1 = scmp.lt.s32.totalorder %s106_s1, %s106_s1 }
   0x7   :  { %p129_p0 = scmp.ne.s32.totalorder %s106_s1, %s128_s22  ;;  %p134_p2 = scmp.lt.s32.totalorder %s128_s22, %s128_s22 }
   0x8   :  { %56 = vperm.xlu1 %118, %v53_v8   ;;  %v75_v33 = vadd.s32 8, %v74_v30 }
   0x9   :  { %28 = vmax.xlane.f32.xlu0 %v27_v9  ;;  %p135_p3 = por %p134_p2, %p133_p1 }
   0xa   :  { %vm81_vm3 = vcmp.lt.s32.totalorder %v75_v33, 12 }
   0xb   :  { %p136_p4 = pnand %p135_p3, %p129_p0 }
  0x83   :  { %v60_v17 = vpop.permute.xlu1 %59 }
  0x84   :  { %vm62_vm1 = vcmp.eq.s32.totalorder %v52_v18, %v60_v17 }
  0x85   :  { %v64_v21 = vsel %vm62_vm1, %v25_v3, 0.0 }
  0x86   :  { %v68_v23 = vsel %vm26_vm0, %v64_v21, 0.0 }
  0x87   :  { %v57_v19 = vpop.permute.xlu1 %56 }
  0x88   :  { %vm61_vm2 = vcmp.eq.s32.totalorder %v52_v18, %v57_v19 }
  0x89   :  { %v63_v25 = vsel %vm61_vm2, %v24_v4, 0.0 }
  0x8a   :  { %v65_v27 = vsel %vm26_vm0, %v63_v25, 0.0 }
  0x92   :  { %v32_v10 = vpop.xlane.xlu0 %31 }
  0x93   :  { %v34_v11 = vsub.f32 %v25_v3, %v32_v10 }
  0x95   :  { %v37_v12 = vmul.f32 1.442695, %v34_v11 }
  0x96   :  { %v29_v13 = vpop.xlane.xlu0 %28 }
  0x97   :  { %120 = vpow2.f32 %v37_v12  ;;  %v33_v15 = vsub.f32 %v24_v4, %v29_v13 }
  0x99   :  { %v35_v16 = vmul.f32 1.442695, %v33_v15 }
  0x9b   :  { %122 = vpow2.f32 %v35_v16 }
  0xa1   :  { %v121_v20 = vpop.eup %120 }
  0xa2   :  { %v42_v22 = vsel %vm26_vm0, %v121_v20, 0.0 }
  0xa3   :  { %43 = vadd.xlane.f32.xlu0 %v42_v22 }
  0xa5   :  { %v123_v24 = vpop.eup %122 }
  0xa6   :  { %v39_v26 = vsel %vm26_vm0, %v123_v24, 0.0 }
  0xa7   :  { %40 = vadd.xlane.f32.xlu1 %v39_v26  ;;  %69 = vadd.xlane.f32.xlu0 %v68_v23 }
  0xab   :  { %66 = vadd.xlane.f32.xlu0 %v65_v27 }
 0x130   :  { %v44_v28 = vpop.xlane.xlu0 %43 }
 0x131   :  { %124 = vlog2.f32 %v44_v28 }
 0x134   :  { %v41_v29 = vpop.xlane.xlu1 %40  ;;  %v70_v34 = vpop.xlane.xlu0 %69 }
 0x135   :  { %126 = vlog2.f32 %v41_v29 }
 0x138   :  { %v67_v41 = vpop.xlane.xlu0 %66 }
 0x13b   :  { %v125_v31 = vpop.eup %124 }
 0x13c   :  { %v48_v32 = vmul.f32 0.6931472, %v125_v31 }
 0x13e   :  { %v50_v35 = vadd.f32 %v48_v32, %v32_v10 }
 0x13f   :  { %v127_v36 = vpop.eup %126 }
 0x140   :  { %v46_v37 = vmul.f32 0.6931472, %v127_v36  ;;  %v72_v38 = vsub.f32 %v50_v35, %v70_v34 }
 0x142   :  { %v49_v39 = vadd.f32 %v46_v37, %v29_v13  ;;  %v83_v40 = vsel %vm81_vm3, %v72_v38, 0.0 }
 0x143   :  { %v86_v44 = vsel %vm84_vm4, %v83_v40, 0.0 }
 0x144   :  { %v71_v42 = vsub.f32 %v49_v39, %v67_v41 }
 0x146   :  { %v85_v43 = vsel %vm84_vm4, %v71_v42, 0.0 }
 0x147   :  { %v87_v45 = vadd.f32 %v86_v44, %v85_v43 }
 0x149   :  { %88 = vadd.xlane.f32.xlu0 %v87_v45 }
 0x1d6   :  { %v89_v46 = vpop.xlane.xlu0 %88 }
 0x1d7   :  { %v90_v47 = vrot.slane %v89_v46, 4 }
 0x1d9   :  { %v91_v48 = vadd.f32 %v90_v47, %v89_v46 }
 0x1db   :  { %v92_v49 = vrot.slane %v91_v48, 2 }
 0x1dd   :  { %v93_v50 = vadd.f32 %v92_v49, %v91_v48 }
 0x1df   :  { %v94_v51 = vrot.slane %v93_v50, 1 }
 0x1e1   :  { %v95_v52 = vadd.f32 %v94_v51, %v93_v50 }
 0x1e3   :  { %114 = vpush %v95_v52 }
 0x214   :  { %s115_s21 = spop %114 }
 0x215   :  { %v97_v53 = vstv %s115_s21 }
 0x216   :  { %98 = vst [vmem:[#allocation2] sm:$0xff] %v97_v53 }
 0x217   :  { %139 = shalt.err (!%p136_p4)
}
 0x218   :  { %s140_s25 = scalar_lea.hbm %s210_s3, 128 }
 0x219   :  { %p141_p5 = scmp.ne.s32.totalorder %s210_s3, %s140_s25  ;;  %p144_p6 = scmp.lt.u32.totalorder %s140_s25, %s210_s3 }
 0x21b   :  { %p146_p7 = pnand %p144_p6, %p141_p5 }
 0x21d   :  { %149 = shalt.err (!%p146_p7)
}
 0x21e   :  { %108 = dma.vmem_to_hbm [thread:$0]  %s106_s1, 128, %s210_s3, [#allocation3]  }
 0x21f   :  { %150 = dma.done.wait [#allocation3], 128  }
 0x220   :  { %151 = vsyncadd [#allocation3], 4294967168 }
 0x221   :  { %112 = vsyncpa [#allocation3], 1 }

</bundles_post_ra>
